<compile_context>
chip_gen: v7x
topology: tpu7x:2x2x1
jax: 0.10.0
libtpu: 0.0.40
codegen_flags: <defaults>
</compile_context>

<pallas_src>
import jax
import jax.numpy as jnp
from jax.experimental import pallas as pl
from jax.experimental.pallas import tpu as pltpu


# ----------------------------------------------------------------------------
# Fused Pallas kernel: (patch-embed ∘ point-decode) as one matmul + threshold
# ----------------------------------------------------------------------------
def _sam_decode_kernel(pat_ref, w2_ref, b2_ref, low_ref):
    # pat_ref: (TM, K) bf16  -- raw-pixel patches (values 0..255, exact in bf16)
    # w2_ref:  (K, N)  bf16  -- folded weight (w_patch @ point_emb^T) / 255, resident
    # b2_ref:  (1, N)  f32   -- folded bias   (b_patch @ point_emb^T), resident
    # low_ref: (TM, N) int8  -- thresholded low-res masks, values in {0, 1}
    logits = (
        jnp.dot(pat_ref[...], w2_ref[...], preferred_element_type=jnp.float32)
        + b2_ref[...]
    )                                                   # (TM, N) f32, single MXU pass
    # SAM thresholds mask logits at 0; emit compact int8 {0,1}.
    low_ref[...] = (logits > 0.0).astype(jnp.int8)


def _choose_tile_m(m_total):
    """Pick the M tile: 256-512 rows/step approaches HBM roofline (v6e/v7x),
    128-multiples map cleanly on v5e's 4x128 MXU, and we keep >= 2 grid steps
    whenever possible so both v7x TensorCores get work."""
    for tm in (512, 256, 128, 64, 32, 16, 8):
        if m_total % tm == 0 and m_total // tm >= 2:
            return tm
    return m_total  # degenerate tiny inputs: one step


def _sam_low_res_masks(patches, w2, b2):
    """patches: (M, K) bf16 raw-pixel patch rows; w2: (K, N) bf16; b2: (1, N) f32.
    Returns (M, N) int8 low-res masks in {0, 1}."""
    M, K = patches.shape
    _, N = w2.shape
    tm = _choose_tile_m(M)
    cost = pl.CostEstimate(
        flops=2 * M * K * N,
        transcendentals=0,
        bytes_accessed=M * K * 2 + K * N * 2 + N * 4 + M * N,
    )
    return pl.pallas_call(
        _sam_decode_kernel,
        out_shape=jax.ShapeDtypeStruct((M, N), jnp.int8),
        grid=(M // tm,),
        in_specs=[
            pl.BlockSpec((tm, K), lambda i: (i, 0)),   # M tile of patches
            pl.BlockSpec((K, N), lambda i: (0, 0)),    # resident folded weight
            pl.BlockSpec((1, N), lambda i: (0, 0)),    # resident folded bias
        ],
        out_specs=pl.BlockSpec((tm, N), lambda i: (i, 0)),
        compiler_params=pltpu.CompilerParams(
            # M tiles are independent -> megacore / v7x dual-TC sharding.
            # Working set (tile + resident weight) is tiny vs. any VMEM budget.
            dimension_semantics=("parallel",),
        ),
        cost_estimate=cost,
    )(patches, w2, b2)


# ----------------------------------------------------------------------------
# Model wrapper
# ----------------------------------------------------------------------------
class SAMSegmentationPallas:
    """Deterministic Pallas stand-in for the SAM wrapper's forward pass."""

    def __init__(self, key, *, patch=16, embed_dim=128, points_per_side=4):
        # TODO(synk): the pretrained ViT-H SAM checkpoint / SamAutomaticMaskGenerator
        # (IoU / stability filtering, NMS, variable mask count) cannot be reproduced;
        # this is a deterministic synthetic mask generator with N = points_per_side^2.
        self.patch = patch
        self.embed_dim = embed_dim            # only used at fold time now
        self.points_per_side = points_per_side
        self.num_masks = points_per_side ** 2

        k1, k2, k3, k4 = jax.random.split(key, 4)
        patch_dim = patch * patch * 3         # 768 -> K is a multiple of 128
        w_patch = jax.random.normal(k1, (patch_dim, embed_dim), jnp.float32) * 0.05
        b_patch = jax.random.normal(k2, (1, embed_dim), jnp.float32) * 0.05
        w_point = jax.random.normal(k3, (2, embed_dim), jnp.float32)
        b_point = jax.random.normal(k4, (1, embed_dim), jnp.float32) * 0.1

        # SAM-style uniform point grid, normalized to [0, 1]
        side = (jnp.arange(points_per_side, dtype=jnp.float32) + 0.5) / points_per_side
        gy, gx = jnp.meshgrid(side, side, indexing="ij")
        points = jnp.stack([gx.ravel(), gy.ravel()], axis=1)     # (N, 2)
        point_emb = points @ w_point + b_point                   # (N, D) f32

        # Fold both linears and the 1/255 normalization into ONE weight/bias:
        #   logits = (img/255) @ w_patch @ PE^T + b_patch @ PE^T
        #          = img_raw @ ((w_patch @ PE^T) / 255) + (b_patch @ PE^T)
        w2 = (w_patch @ point_emb.T) * (1.0 / 255.0)             # (K, N) f32
        b2 = b_patch @ point_emb.T                               # (1, N) f32
        self.w2 = w2.astype(jnp.bfloat16)                        # bf16 MXU RHS
        self.b2 = b2                                             # f32 bias

        self._forward = jax.jit(self._forward_impl)

    # -- jitted forward body --------------------------------------------------
    def _forward_impl(self, img):
        H, W, C = img.shape
        p = self.patch
        gh, gw = H // p, W // p
        M = gh * gw
        N = self.num_masks

        # Patchify fused with the uint8 -> bf16 cast in one XLA pass.  Raw
        # pixel values (0..255) are exact in bf16; the 1/255 lives in w2.
        # TODO(synk): stream uint8 image rows straight into the kernel (block of
        # p image rows + per-row accumulate against a (p, p*C, N) weight) to
        # drop this patchify pass entirely and halve kernel-path HBM traffic.
        patches = (
            img.reshape(gh, p, gw, p, C)
            .transpose(0, 2, 1, 3, 4)
            .reshape(M, p * p * C)
            .astype(jnp.bfloat16)
        )

        # --- single fused Pallas kernel: matmul + bias + threshold ----------
        low = _sam_low_res_masks(patches, self.w2, self.b2)      # (M, N) int8
        lowb = low.reshape(gh, gw, N).transpose(2, 0, 1).astype(jnp.bool_)  # (N, gh, gw)

        # nearest-neighbour upsample to the stacked [N, H, W] bool tensor in one
        # fused XLA pass (single bool write of the full-res output; this is the
        # dominant HBM write of the forward — no extra pass is added over it).
        masks = jnp.broadcast_to(
            lowb[:, :, None, :, None], (N, gh, p, gw, p)
        ).reshape(N, H, W)

        # xywh boxes from the LOW-RES grid, scaled by p (identical to reducing
        # the upsampled mask, p^2 x fewer elements reduced).
        col_any = lowb.any(axis=1)                               # (N, gw)
        row_any = lowb.any(axis=2)                               # (N, gh)
        gxs = jnp.arange(gw, dtype=jnp.int32)[None, :]
        gys = jnp.arange(gh, dtype=jnp.int32)[None, :]
        big = jnp.int32(1 << 30)
        gx_min = jnp.min(jnp.where(col_any, gxs, big), axis=1)
        gx_max = jnp.max(jnp.where(col_any, gxs, -1), axis=1)
        gy_min = jnp.min(jnp.where(row_any, gys, big), axis=1)
        gy_max = jnp.max(jnp.where(row_any, gys, -1), axis=1)
        empty = ~col_any.any(axis=1)

        # SAM convention: x_max/y_max are inclusive pixel indices, w = x_max - x_min.
        # TODO(synk): torch SamAutomaticMaskGenerator filters empty/degenerate masks;
        # here empty masks deterministically yield [0, 0, 0, 0].
        x1 = jnp.where(empty, 0, p * gx_min).astype(jnp.float32)
        y1 = jnp.where(empty, 0, p * gy_min).astype(jnp.float32)
        bw = jnp.where(empty, 0, p * (gx_max - gx_min) + (p - 1)).astype(jnp.float32)
        bh = jnp.where(empty, 0, p * (gy_max - gy_min) + (p - 1)).astype(jnp.float32)

        # torchvision box_convert(xywh -> xyxy) = [x, y, x+w, y+h]; plain JAX —
        # a dedicated pallas_call for 4*N adds would be pure launch overhead.
        boxes_xyxy = jnp.stack([x1, y1, x1 + bw, y1 + bh], axis=1)
        return masks, boxes_xyxy

    def forward(self, img):
        """img: uint8 [H, W, C] -> (masks bool [N, H, W], boxes_xyxy float32 [N, 4])."""
        return self._forward(img)


# ----------------------------------------------------------------------------
if __name__ == "__main__":
    key = jax.random.PRNGKey(0)
    k_model, k_img = jax.random.split(key)

    model = SAMSegmentationPallas(k_model, patch=16, embed_dim=128, points_per_side=4)

    H, W, C = 64, 64, 3
    img = jax.random.randint(k_img, (H, W, C), 0, 256, dtype=jnp.int32).astype(jnp.uint8)

    masks, boxes_xyxy = model.forward(img)
    jax.block_until_ready((masks, boxes_xyxy))

    N = model.num_masks
    assert masks.shape == (N, H, W) and masks.dtype == jnp.bool_
    assert boxes_xyxy.shape == (N, 4) and boxes_xyxy.dtype == jnp.float32
    # xyxy invariant: x2 >= x1, y2 >= y1
    assert bool(jnp.all(boxes_xyxy[:, 2] >= boxes_xyxy[:, 0]))
    assert bool(jnp.all(boxes_xyxy[:, 3] >= boxes_xyxy[:, 1]))

    print("KERNEL_OK")
</pallas_src>

<mosaic_0001>
module attributes {stable_mosaic.version = 11 : i64} {
  func.func @_sam_decode_kernel(%arg0: i32, %arg1: memref<8x768xbf16, #tpu.memory_space<vmem>>, %arg2: memref<768x16xbf16, #tpu.memory_space<vmem>>, %arg3: memref<1x16xf32, #tpu.memory_space<vmem>>, %arg4: memref<8x16xi8, #tpu.memory_space<vmem>>) attributes {dimension_semantics = [#tpu.dimension_semantics<parallel>], iteration_bounds = array<i64: 2>, scalar_prefetch = 0 : i64, scratch_operands = 0 : i64, tpu.core_type = #tpu.core_type<tc>, window_params = [{transform_indices = @transform_0, window_bounds = array<i64: 8, 768>}, {pipeline_mode = #tpu.pipeline_mode<synchronous>, transform_indices = @transform_1, window_bounds = array<i64: 768, 16>}, {pipeline_mode = #tpu.pipeline_mode<synchronous>, transform_indices = @transform_2, window_bounds = array<i64: 1, 16>}, {transform_indices = @transform_3, window_bounds = array<i64: 8, 16>}]} {
    %c0 = arith.constant 0 : index
    %c0_0 = arith.constant 0 : index
    %0 = vector.load %arg1[%c0, %c0_0] : memref<8x768xbf16, #tpu.memory_space<vmem>>, vector<8x768xbf16>
    %c0_1 = arith.constant 0 : index
    %c0_2 = arith.constant 0 : index
    %1 = vector.load %arg2[%c0_1, %c0_2] : memref<768x16xbf16, #tpu.memory_space<vmem>>, vector<768x16xbf16>
    %cst = arith.constant dense<0.000000e+00> : vector<8x16xf32>
    %2 = tpu.matmul %0, %1, %cst {dimension_numbers = #tpu.dot_dimension_numbers<[1], [0], [0], [1], [0, 0, 1, 1], [], []>} : vector<8x768xbf16>, vector<768x16xbf16>, vector<8x16xf32> -> vector<8x16xf32>
    %c0_3 = arith.constant 0 : index
    %c0_4 = arith.constant 0 : index
    %3 = vector.load %arg3[%c0_3, %c0_4] : memref<1x16xf32, #tpu.memory_space<vmem>>, vector<1x16xf32>
    %4 = vector.broadcast %3 : vector<1x16xf32> to vector<8x16xf32>
    %5 = arith.addf %2, %4 : vector<8x16xf32>
    %cst_5 = arith.constant 0.000000e+00 : f32
    %6 = vector.broadcast %cst_5 : f32 to vector<8x16xf32>
    %7 = arith.cmpf ogt, %5, %6 : vector<8x16xf32>
    %8 = arith.extui %7 : vector<8x16xi1> to vector<8x16xi8>
    %c0_6 = arith.constant 0 : index
    %c0_7 = arith.constant 0 : index
    %9 = vector.load %arg4[%c0_6, %c0_7] : memref<8x16xi8, #tpu.memory_space<vmem>>, vector<8x16xi8>
    tpu.vector_store %arg4[%c0_6, %c0_7], %8 {strides = array<i32>} : memref<8x16xi8, #tpu.memory_space<vmem>>, vector<8x16xi8>,
    return
  }
  func.func @transform_0(%arg0: i32) -> (i32, i32) {
    %c0_i32 = arith.constant 0 : i32
    %c0_i32_0 = arith.constant 0 : i32
    return %arg0, %c0_i32 : i32, i32
  }
  func.func @transform_1(%arg0: i32) -> (i32, i32) {
    %c0_i32 = arith.constant 0 : i32
    %c0_i32_0 = arith.constant 0 : i32
    %c0_i32_1 = arith.constant 0 : i32
    return %c0_i32, %c0_i32_0 : i32, i32
  }
  func.func @transform_2(%arg0: i32) -> (i32, i32) {
    %c0_i32 = arith.constant 0 : i32
    %c0_i32_0 = arith.constant 0 : i32
    %c0_i32_1 = arith.constant 0 : i32
    return %c0_i32, %c0_i32_0 : i32, i32
  }
  func.func @transform_3(%arg0: i32) -> (i32, i32) {
    %c0_i32 = arith.constant 0 : i32
    %c0_i32_0 = arith.constant 0 : i32
    return %arg0, %c0_i32 : i32, i32
  }
}

</mosaic_0001>

<bundles_post_ra>
// kernel: _forward_impl.1
= control target key start
LH: loop header
LB: loop body
LE: loop exit
PB: predicated region body
PF: predicated region fallthrough
CT: control target
= control target key end

     0   :  { %s989_s12 = smov 0   ;;  %s1166_s0 = inlined_call_operand.vmem [shape: bf16[16,768], index: 0, kind: input, shape index: {}]   ;;  %s1167_s1 = inlined_call_operand.vmem [shape: bf16[768,16], index: 1, kind: input, shape index: {}]   ;;  %s1168_s2 = inlined_call_operand.vmem [shape: f32[1,16], index: 2, kind: input, shape index: {}]   ;;  %s1169_s3 = inlined_call_operand.vmem [shape: s8[16,16], index: 3, kind: output, shape index: {}]  }
   0x1 LB: > { %s766_s13 = sadd.s32 4294967295, %s966_s12   ;;  %p770_p0 = scmp.ge.s32.totalorder %s966_s12, 1  ;;  %s966_s12 = sphi %s989_s12, %s13_s12  }
   0x2   : > { %p137_p1 = scmp.lt.s32.totalorder %s966_s12, 3 }
   0x4   : > { %p138_p2 = pnand %p770_p0, %p137_p1 }
   0x5   : > { %v906_v0 = vld [vmem:[%s1167_s1 + $0x40] sm:$0xff] (!%p138_p2)   ;;  %v910_v4 = vld [vmem:[%s1167_s1 + $0x48] sm:$0xff] (!%p138_p2)   ;;  %v914_v8 = vld [vmem:[%s1167_s1 + $0x50] sm:$0xff] (!%p138_p2)   ;;  %p160_p3 = scmp.lt.s32.totalorder (!%p138_p2), %s766_s13, 1  ;;  %vm711_vm2 = vcmask (!%p138_p2), 123904  }
   0x6   : > { %141 = sbr.rel (%p138_p2) target bundleno = 292 (0x124), region = 32  ;;  %v907_v1 = vld [vmem:[%s1167_s1] sm:$0xff] (!%p138_p2)   ;;  %830 = vmatprep.subr.bf16.mxu0 (!%p138_p2), %v906_v0  ;;  %v911_v5 = vld [vmem:[%s1167_s1 + $0x8] sm:$0xff] (!%p138_p2)   ;;  %v915_v9 = vld [vmem:[%s1167_s1 + $0x10] sm:$0xff] (!%p138_p2)  }
   0x7   : > { %v908_v2 = vld [vmem:[%s1167_s1 + $0xc0] sm:$0xff] (!%p138_p2)   ;;  %831 = vmatpush3.bf16.msra.mxu0 (!%p138_p2), %v907_v1  ;;  %v912_v6 = vld [vmem:[%s1167_s1 + $0xc8] sm:$0xff] (!%p138_p2)   ;;  %v916_v10 = vld [vmem:[%s1167_s1 + $0xd0] sm:$0xff] (!%p138_p2)  }
   0x8   : > { %v909_v3 = vld [vmem:[%s1167_s1 + $0x80] sm:$0xff] (!%p138_p2)   ;;  %852 = vmatprep.subr.bf16.mxu1 (!%p138_p2), %v908_v2  ;;  %832 = vmatprep.subr.bf16.mxu0 (!%p138_p2), %v910_v4  ;;  %v913_v7 = vld [vmem:[%s1167_s1 + $0x88] sm:$0xff] (!%p138_p2)   ;;  %v917_v11 = vld [vmem:[%s1167_s1 + $0x90] sm:$0xff] (!%p138_p2)  }
   0x9   : > { %853 = vmatpush3.bf16.msra.mxu1 (!%p138_p2), %v909_v3  ;;  %v918_v12 = vld [vmem:[%s1167_s1 + $0x58] sm:$0xff] (!%p138_p2)   ;;  %v922_v16 = vld [vmem:[%s1167_s1 + $0x60] sm:$0xff] (!%p138_p2)   ;;  %v926_v20 = vld [vmem:[%s1167_s1 + $0x68] sm:$0xff] (!%p138_p2)  }
   0xa   : > { %854 = vmatprep.subr.bf16.mxu1 (!%p138_p2), %v912_v6  ;;  %v919_v13 = vld [vmem:[%s1167_s1 + $0x18] sm:$0xff] (!%p138_p2)   ;;  %v923_v17 = vld [vmem:[%s1167_s1 + $0x20] sm:$0xff] (!%p138_p2)   ;;  %v927_v21 = vld [vmem:[%s1167_s1 + $0x28] sm:$0xff] (!%p138_p2)  }
   0xb   : > { %833 = vmatpush3.bf16.msra.mxu0 (!%p138_p2), %v911_v5  ;;  %v920_v14 = vld [vmem:[%s1167_s1 + $0xd8] sm:$0xff] (!%p138_p2)   ;;  %v924_v18 = vld [vmem:[%s1167_s1 + $0xe0] sm:$0xff] (!%p138_p2)   ;;  %v928_v22 = vld [vmem:[%s1167_s1 + $0xe8] sm:$0xff] (!%p138_p2)  }
   0xc   : > { %834 = vmatprep.subr.bf16.mxu0 (!%p138_p2), %v914_v8  ;;  %v921_v15 = vld [vmem:[%s1167_s1 + $0x98] sm:$0xff] (!%p138_p2)   ;;  %v925_v19 = vld [vmem:[%s1167_s1 + $0xa0] sm:$0xff] (!%p138_p2)   ;;  %v929_v23 = vld [vmem:[%s1167_s1 + $0xa8] sm:$0xff] (!%p138_p2)  }
   0xd   : > { %855 = vmatpush3.bf16.msra.mxu1 %v913_v7  ;;  %s1171_s13 = smov (!%p160_p3, %s766_s13), 1  ;;  %v930_v24 = vld [vmem:[%s1167_s1 + $0x70] sm:$0xff]   ;;  %v934_v28 = vld [vmem:[%s1167_s1 + $0x78] sm:$0xff]   ;;  %v940_v35 = vld [vmem:[%s1167_s1 + $0x140] sm:$0xff]  }
   0xe   : > { %856 = vmatprep.subr.bf16.mxu1 %v916_v10  ;;  %s896_s14 = smul.u32 24, %s1171_s13  ;;  %v931_v25 = vld [vmem:[%s1167_s1 + $0x30] sm:$0xff]   ;;  %v935_v29 = vld [vmem:[%s1167_s1 + $0x38] sm:$0xff]   ;;  %v943_v39 = vld [vmem:[%s1167_s1 + $0x100] sm:$0xff]   ;;  %s772_s16 = sshll.u32 %s1171_s13, 1 }
   0xf   : > { %835 = vmatpush3.bf16.msra.mxu0 %v915_v9  ;;  %v932_v26 = vld [vmem:[%s1167_s1 + $0xf0] sm:$0xff]   ;;  %v936_v30 = vld [vmem:[%s1167_s1 + $0xf8] sm:$0xff]   ;;  %v944_v40 = vld [vmem:[%s1167_s1 + $0x148] sm:$0xff]   ;;  %s168_s19 = scalar_lea.vmem %s1169_s3, %s772_s16 }
  0x10   : > { %836 = vmatprep.subr.bf16.mxu0 %v918_v12  ;;  %v933_v27 = vld [vmem:[%s1167_s1 + $0xb0] sm:$0xff]   ;;  %s1094_s25 = scalar_lea.vmem %s1166_s0, %s896_s14  ;;  %v939_v34 = vld [vmem:[%s1167_s1 + $0xb8] sm:$0xff]   ;;  %v945_v41 = vld [vmem:[%s1167_s1 + $0x108] sm:$0xff]   ;;  %v968_v12 = vmov 0  }
  0x11   : > { %857 = vmatpush3.bf16.msra.mxu1 %v917_v11  ;;  %v172_v31 = vld [vmem:[%s1094_s25] sm:$0xff]  ;;  %v173_v36 = vld [vmem:[%s1094_s25 + $0x8] sm:$0xff]  ;;  %v946_v42 = vld [vmem:[%s1167_s1 + $0x150] sm:$0xff]  }
  0x12   : > { %858 = vmatprep.subr.bf16.mxu1 %v920_v14  ;;  %v774_v32 = vcombine.low %v172_v31, %v172_v31  ;;  %v775_v33 = vcombine.high %v172_v31, %v172_v31  ;;  %v776_v37 = vcombine.low %v173_v36, %v173_v36  ;;  %v777_v38 = vcombine.high %v173_v36, %v173_v36  ;;  %v947_v43 = vld [vmem:[%s1167_s1 + $0x110] sm:$0xff]   ;;  %v948_v44 = vld [vmem:[%s1167_s1 + $0x158] sm:$0xff]   ;;  %v950_v46 = vld [vmem:[%s1167_s1 + $0x160] sm:$0xff]  }
  0x13   : > { %837 = vmatpush3.bf16.msra.mxu0 %v919_v13  ;;  %v949_v45 = vld [vmem:[%s1167_s1 + $0x118] sm:$0xff]   ;;  %v951_v47 = vld [vmem:[%s1167_s1 + $0x120] sm:$0xff]   ;;  %v174_v48 = vld [vmem:[%s1094_s25 + $0x10] sm:$0xff] }
  0x14   : > { %838 = vmatprep.subr.bf16.mxu0 %v922_v16  ;;  %619 = vmatprep.mubr.bf16.mxu0 %v775_v33  ;;  %v952_v49 = vld [vmem:[%s1167_s1 + $0x168] sm:$0xff]   ;;  %v779_v50 = vcombine.high %v174_v48, %v174_v48  ;;  %v954_v52 = vld [vmem:[%s1167_s1 + $0x170] sm:$0xff]   ;;  %v956_v54 = vld [vmem:[%s1167_s1 + $0x178] sm:$0xff]   ;;  %v778_v56 = vcombine.low %v174_v48, %v174_v48 }
  0x15   : > { %859 = vmatpush3.bf16.msra.mxu1 %v921_v15  ;;  %659 = vmatprep.mubr.bf16.mxu1 %v777_v38  ;;  %v953_v51 = vld [vmem:[%s1167_s1 + $0x128] sm:$0xff]   ;;  %v955_v53 = vld [vmem:[%s1167_s1 + $0x130] sm:$0xff]   ;;  %v957_v55 = vld [vmem:[%s1167_s1 + $0x138] sm:$0xff]  }
  0x16   : > { %860 = vmatprep.subr.bf16.mxu1 %v924_v18  ;;  %v773_v58 = vld [vmem:[%s1168_s2] ss:$0 sm:$0xff] }
  0x17   : > { %839 = vmatpush3.bf16.msra.mxu0 %v923_v17 }
  0x18   : > { %840 = vmatprep.subr.bf16.mxu0 %v926_v20 }
  0x19   : > { %861 = vmatpush3.bf16.msra.mxu1 %v925_v19 }
  0x1a   : > { %862 = vmatprep.subr.bf16.mxu1 %v928_v22 }
  0x1b   : > { %841 = vmatpush3.bf16.msra.mxu0 %v927_v21 }
  0x1c   : > { %842 = vmatprep.subr.bf16.mxu0 %v930_v24 }
  0x1d   : > { %863 = vmatpush3.bf16.msra.mxu1 %v929_v23 }
  0x1e   : > { %864 = vmatprep.subr.bf16.mxu1 %v932_v26 }
  0x1f   : > { %843 = vmatpush3.bf16.msra.mxu0 %v931_v25 }
  0x20   : > { %844 = vmatprep.subr.bf16.mxu0 %v934_v28 }
  0x21   : > { %865 = vmatpush3.bf16.msra.mxu1 %v933_v27 }
  0x22   : > { %866 = vmatprep.subr.bf16.mxu1 %v936_v30 }
  0x23   : > { %845 = vmatpush3.bf16.msra.mxu0 %v935_v29 }
  0x24   : > { %874 = vmatprep.subr.bf16.mxu0 %v940_v35 }
  0x25   : > { %867 = vmatpush3.bf16.msra.mxu1 %v939_v34 }
  0x26   : > { %620 = vmatmul.mubr.bf16.vlgmr.msra.gmra.mrb[0].mxu0 %v774_v32 }
  0x27   : > { %875 = vmatpush3.bf16.msra.mxu0 %v943_v39  ;;  %699 = vmatprep.mubr.bf16.mxu0 %v779_v50 }
  0x28   : > { %660 = vmatmul.mubr.bf16.vlgmr.msra.gmra.mrb[0].mxu1 %v776_v37  ;;  %876 = vmatprep.subr.bf16.mxu0 %v944_v40 }
  0x2b   : > { %877 = vmatpush3.bf16.msra.mxu0 %v945_v41 }
  0x2c   : > { %878 = vmatprep.subr.bf16.mxu0 %v946_v42 }
  0x2f   : > { %879 = vmatpush3.bf16.msra.mxu0 %v947_v43 }
  0x30   : > { %880 = vmatprep.subr.bf16.mxu0 %v948_v44 }
  0x33   : > { %881 = vmatpush3.bf16.msra.mxu0 %v949_v45 }
  0x34   : > { %882 = vmatprep.subr.bf16.mxu0 %v950_v46 }
  0x37   : > { %883 = vmatpush3.bf16.msra.mxu0 %v951_v47 }
  0x38   : > { %884 = vmatprep.subr.bf16.mxu0 %v952_v49 }
  0x3b   : > { %885 = vmatpush3.bf16.msra.mxu0 %v953_v51 }
  0x3c   : > { %886 = vmatprep.subr.bf16.mxu0 %v954_v52 }
  0x3f   : > { %887 = vmatpush3.bf16.msra.mxu0 %v955_v53 }
  0x40   : > { %888 = vmatprep.subr.bf16.mxu0 %v956_v54 }
  0x43   : > { %889 = vmatpush3.bf16.msra.mxu0 %v957_v55 }
  0x46   : > { %700 = vmatmul.mubr.bf16.vlgmr.msra.gmra.mrb[4].mxu0 %v778_v56 }
  0xf9   : > { %v846_v57 = vpop.f32.mrb[0].mxu0 }
  0xfa   : > { %v847_v59 = vpop.f32.mrb[1].mxu0 }
  0xfb   : > { %v848_v60 = vadd.f32 %v847_v59, %v846_v57  ;;  %v849_v61 = vpop.f32.mrb[2].mxu0  ;;  %v868_v62 = vpop.f32.mrb[0].mxu1 }
  0xfc   : > { %v850_v63 = vpop.f32.mrb[3].mxu0  ;;  %v869_v0 = vpop.f32.mrb[1].mxu1 }
  0xfd   : > { %v622_v1 = vadd.f32 %v848_v60, %v773_v58  ;;  %v870_v2 = vadd.f32 %v869_v0, %v868_v62  ;;  %v871_v3 = vpop.f32.mrb[2].mxu1 }
  0xfe   : > { %v872_v4 = vpop.f32.mrb[3].mxu1 }
  0xff   : > { %v662_v5 = vadd.f32 %v870_v2, %v622_v1 }
 0x119   : > { %v890_v6 = vpop.f32.mrb[4].mxu0 }
 0x11a   : > { %v891_v7 = vpop.f32.mrb[5].mxu0 }
 0x11b   : > { %v892_v8 = vadd.f32 %v891_v7, %v890_v6  ;;  %v893_v9 = vpop.f32.mrb[6].mxu0 }
 0x11c   : > { %v894_v10 = vpop.f32.mrb[7].mxu0 }
 0x11d   : > { %v702_v11 = vadd.f32 %v892_v8, %v662_v5 }
 0x11f   : > { %vm707_vm0 = vcmp.gt.f32.partialorder %v702_v11, 0.0 }
 0x120   : > { %vm708_vm1 = vmpackc.low %vm707_vm0, %vm707_vm0 }
 0x121   : > { %vm709_vm3 = vmpackc.even %vm708_vm1, %vm708_vm1 }
 0x122   : > { %v710_v13 = vsel %vm709_vm3, 16843009, %v968_v12 }
 0x123   : > { %712 = vst.msk [vmem:[%s168_s19] sm:$0x3] %vm711_vm2, %v710_v13 }
 0x124 PF: > { %s13_s12 = sadd.s32 1, %s966_s12  }
 0x125   : > { %p10_p4 = scmp.ge.s32.totalorder %s13_s12, 4  }
 0x127   :  { %12 = sbr.rel (!%p10_p4) target bundleno = 1 (0x1), region = 62 }

</bundles_post_ra>
